<compile_context>
chip_gen: v5e
topology: v5e:2x2
jax: 0.10.0
libtpu: 0.0.40
codegen_flags: <defaults>
</compile_context>

<pallas_src>
import jax
import jax.numpy as jnp
from jax.experimental import pallas as pl
from jax.experimental.pallas import tpu as pltpu


def _triu1_mask_kernel(mask_ref, x_ref, o_ref):
    # mask_ref: (1, n*n) constant, resident in VMEM across all grid steps.
    # x_ref / o_ref: (TB, n*n) block.
    o_ref[...] = x_ref[...] * mask_ref[...]


def _choose_tb(B: int, row_bytes: int) -> int:
    """Pick a batch-tile size: ~2 MiB per block, multiple of 8 sublanes."""
    target_bytes = 2 << 20  # ~2 MiB per block (safe on v7x, good on v5e/v6e)
    tb = max(1, target_bytes // max(1, row_bytes))
    tb = max(8, (tb // 8) * 8)
    b_ceil8 = -(-B // 8) * 8
    tb = min(tb, b_ceil8)
    # Prefer >= 2 grid steps so both v7x TensorCores get work.
    if B >= 16 and tb >= b_ceil8:
        half = -(-B // 2)
        tb = max(8, -(-half // 8) * 8)
    return tb


def he_forward(X: jax.Array) -> jax.Array:
    """JAX/Pallas equivalent of he.forward: X.triu(1) on the last two dims."""
    if X.ndim < 2:
        raise ValueError("weights has dimension < 2")
    if X.shape[-2] != X.shape[-1]:
        raise ValueError("not sqaured matrix")

    n = X.shape[-1]
    batch_shape = X.shape[:-2]
    B = 1
    for d in batch_shape:
        B *= d

    if B == 0 or n == 0:
        # Empty tensor: nothing to mask.
        return X

    nn_flat = n * n
    itemsize = jnp.dtype(X.dtype).itemsize
    tb = _choose_tb(B, nn_flat * itemsize)

    num_blocks = -(-B // tb)
    B_padded = num_blocks * tb

    x_flat = X.reshape((B, nn_flat))
    if B_padded != B:
        x_flat = jnp.pad(x_flat, ((0, B_padded - B), (0, 0)))

    # Constant strictly-upper-triangular mask, flattened to (1, n*n).
    mask = jnp.triu(jnp.ones((n, n), dtype=X.dtype), k=1).reshape(1, nn_flat)

    out_flat = pl.pallas_call(
        _triu1_mask_kernel,
        out_shape=jax.ShapeDtypeStruct((B_padded, nn_flat), X.dtype),
        grid_spec=pltpu.PrefetchScalarGridSpec(
            num_scalar_prefetch=0,
            grid=(num_blocks,),
            in_specs=[
                # Mask: same block (0, 0) every step -> stays resident in VMEM.
                pl.BlockSpec((1, nn_flat), lambda b: (0, 0)),
                # Data: lane-dense (TB, n*n) blocks marching down the batch.
                pl.BlockSpec((tb, nn_flat), lambda b: (b, 0)),
            ],
            out_specs=pl.BlockSpec((tb, nn_flat), lambda b: (b, 0)),
        ),
        compiler_params=pltpu.CompilerParams(
            dimension_semantics=("parallel",),
            vmem_limit_bytes=32 * 1024 * 1024,
        ),
    )(mask, x_flat)

    if B_padded != B:
        out_flat = out_flat[:B]
    return out_flat.reshape(X.shape)


if __name__ == "__main__":
    key = jax.random.PRNGKey(0)
    # Small shape consistent with the module: batch dims (2, 4), square n=16.
    X = jax.random.normal(key, (2, 4, 16, 16), dtype=jnp.float32)

    out = he_forward(X)
    out = jax.block_until_ready(out)

    # Reference check: strictly upper triangular part.
    ref = jnp.triu(X, k=1)
    assert out.shape == X.shape
    assert jnp.allclose(out, ref), "mismatch vs jnp.triu(X, 1)"

    print("KERNEL_OK")
</pallas_src>

<mosaic_0001>
module attributes {stable_mosaic.version = 11 : i64} {
  func.func @_triu1_mask_kernel(%arg0: i32, %arg1: memref<1x256xf32, #tpu.memory_space<vmem>>, %arg2: memref<8x256xf32, #tpu.memory_space<vmem>>, %arg3: memref<8x256xf32, #tpu.memory_space<vmem>>) attributes {dimension_semantics = [#tpu.dimension_semantics<parallel>], iteration_bounds = array<i64: 1>, scalar_prefetch = 0 : i64, scratch_operands = 0 : i64, tpu.core_type = #tpu.core_type<tc>, window_params = [{pipeline_mode = #tpu.pipeline_mode<synchronous>, transform_indices = @transform_0, window_bounds = array<i64: 1, 256>}, {transform_indices = @transform_1, window_bounds = array<i64: 8, 256>}, {transform_indices = @transform_2, window_bounds = array<i64: 8, 256>}]} {
    %c0 = arith.constant 0 : index
    %c0_0 = arith.constant 0 : index
    %0 = vector.load %arg2[%c0, %c0_0] : memref<8x256xf32, #tpu.memory_space<vmem>>, vector<8x256xf32>
    %c0_1 = arith.constant 0 : index
    %c0_2 = arith.constant 0 : index
    %1 = vector.load %arg1[%c0_1, %c0_2] : memref<1x256xf32, #tpu.memory_space<vmem>>, vector<1x256xf32>
    %2 = vector.broadcast %1 : vector<1x256xf32> to vector<8x256xf32>
    %3 = arith.mulf %0, %2 : vector<8x256xf32>
    %c0_3 = arith.constant 0 : index
    %c0_4 = arith.constant 0 : index
    %4 = vector.load %arg3[%c0_3, %c0_4] : memref<8x256xf32, #tpu.memory_space<vmem>>, vector<8x256xf32>
    tpu.vector_store %arg3[%c0_3, %c0_4], %3 {strides = array<i32>} : memref<8x256xf32, #tpu.memory_space<vmem>>, vector<8x256xf32>,
    return
  }
  func.func @transform_0(%arg0: i32) -> (i32, i32) {
    %c0_i32 = arith.constant 0 : i32
    %c0_i32_0 = arith.constant 0 : i32
    %c0_i32_1 = arith.constant 0 : i32
    return %c0_i32, %c0_i32_0 : i32, i32
  }
  func.func @transform_1(%arg0: i32) -> (i32, i32) {
    %c0_i32 = arith.constant 0 : i32
    %c0_i32_0 = arith.constant 0 : i32
    return %arg0, %c0_i32 : i32, i32
  }
  func.func @transform_2(%arg0: i32) -> (i32, i32) {
    %c0_i32 = arith.constant 0 : i32
    %c0_i32_0 = arith.constant 0 : i32
    return %arg0, %c0_i32 : i32, i32
  }
}

</mosaic_0001>

<bundles_post_ra>
// kernel: tpu_custom_call.1
= control target key start
LH: loop header
LB: loop body
LE: loop exit
PB: predicated region body
PF: predicated region fallthrough
CT: control target
= control target key end

     0   :  { %7 = vsyncpa [#allocation3], 0  ;;  %s178_s0 = inlined_call_operand.hbm [shape: f32[1,256], index: 0, kind: input, shape index: {}]   ;;  %s179_s1 = inlined_call_operand.hbm [shape: f32[8,256], index: 1, kind: input, shape index: {}]   ;;  %s180_s2 = inlined_call_operand.hbm [shape: f32[8,256], index: 2, kind: output, shape index: {}]  }
   0x1   :  { %8 = vsyncpa [#allocation6], 0 }
   0x2   :  { %9 = vsyncpa [#allocation4], 0  ;;  %s15_s11 = sshll.u32 %s178_s0, 4  ;;  %s151_s12 = smov [#allocation2]   ;;  %s16_s11 = int_to_ptr.hbm [resolvable:$true] %s15_s11 }
   0x3   :  { %s17_s13 = sshll.u32 %s151_s12, 4  ;;  %s26_s16 = sshll.u32 %s179_s1, 4  ;;  %s18_s13 = int_to_ptr.vmem [resolvable:$true] %s17_s13  ;;  %s27_s16 = int_to_ptr.hbm [resolvable:$true] %s26_s16 }
   0x4   :  { %20 = dma.hbm_to_vmem [thread:$0]  %s16_s11, 32, %s18_s13, [#allocation3]  }
   0x5   :  { %s152_s17 = smov [#allocation5]  }
   0x6   :  { %s28_s18 = sshll.u32 %s152_s17, 4  ;;  %s29_s18 = int_to_ptr.vmem [resolvable:$true] %s28_s18 }
   0x7   :  { %31 = dma.hbm_to_vmem [thread:$0]  %s27_s16, 256, %s29_s18, [#allocation6]  }
   0x8   :  { %145 = dma.done.wait [#allocation3], 32  }
   0x9   :  { %146 = vsyncadd [#allocation3], 4294967264 }
   0xa   :  { %147 = dma.done.wait [#allocation6], 256  }
   0xb   :  { %148 = vsyncadd [#allocation6], 4294967040  ;;  %v40_v0 = vld [vmem:[#allocation5] sm:$0xff]  ;;  %v42_v1 = vld [vmem:[#allocation2] sm:$0x3]  ;;  %s153_s0 = smov [#allocation7]  }
   0xc   :  { %v41_v2 = vld [vmem:[#allocation5 + $0x8] sm:$0xff]  ;;  %v44_v3 = vperm.slane %v42_v1, 0  ;;  %v45_v4 = vperm.slane %v42_v1, 1  ;;  %s57_s19 = sshll.u32 %s153_s0, 4  ;;  %s59_s1 = sshll.u32 %s180_s2, 4  ;;  %s58_s19 = int_to_ptr.vmem [resolvable:$true] %s57_s19  ;;  %s60_s1 = int_to_ptr.hbm [resolvable:$true] %s59_s1 }
   0xe   :  { %v48_v5 = vmul.f32 %v44_v3, %v40_v0  ;;  %v49_v6 = vmul.f32 %v45_v4, %v41_v2 }
  0x10   :  { %50 = vst [vmem:[#allocation7] sm:$0xff] %v48_v5 }
  0x11   :  { %51 = vst [vmem:[#allocation7 + $0x8] sm:$0xff] %v49_v6 }
  0x12   :  { %62 = dma.vmem_to_hbm [thread:$0]  %s58_s19, 256, %s60_s1, [#allocation4]  }
  0x13   :  { %149 = dma.done.wait [#allocation4], 256  }
  0x14   :  { %150 = vsyncadd [#allocation4], 4294967040 }
  0x15   :  { %67 = vsyncpa [#allocation3], 1 }
  0x16   :  { %68 = vsyncpa [#allocation6], 1 }
  0x17   :  { %69 = vsyncpa [#allocation4], 1 }

</bundles_post_ra>
